<compile_context>
chip_gen: v7x
topology: tpu7x:2x2x1
jax: 0.10.0
libtpu: 0.0.40
codegen_flags: <defaults>
</compile_context>

<pallas_src>
import functools

import jax
import jax.numpy as jnp
from jax.experimental import pallas as pl
from jax.experimental.pallas import tpu as pltpu

LANE = 128


def _round_up(a, b):
    return ((a + b - 1) // b) * b


def pooling_layer_kernel(x_ref, w1_ref, b1_ref, w2_ref, b2_ref, o_ref):
    # x arrives f32; cast to the matmul dtype in-kernel (VPU cast, hidden under MXU/DMA).
    x = x_ref[...].astype(w1_ref.dtype)                              # (tm, IN)

    # Linear 1 with eval-mode BatchNorm folded into (w1, b1); f32 accumulation on the MXU.
    h = jnp.dot(x, w1_ref[...], preferred_element_type=jnp.float32) + b1_ref[...]

    # ReLU (dropout is identity in eval mode).
    h = jnp.maximum(h, 0.0)

    # Linear 2 (OUT padded to a full 128-lane vreg; padded columns carry a -1e9 f32 bias).
    h = h.astype(w2_ref.dtype)
    y = jnp.dot(h, w2_ref[...], preferred_element_type=jnp.float32) + b2_ref[...]

    # Numerically stable log_softmax over the (padded) last dim, all in f32; padded logits
    # contribute exp(-1e9 - m) == 0 to the sum and never win the max, so valid lanes are exact.
    m = jnp.max(y, axis=-1, keepdims=True)
    e = jnp.exp(y - m)
    lse = jnp.log(jnp.sum(e, axis=-1, keepdims=True)) + m

    # Only the final store is narrowed (bf16 when use_bf16=True) to halve HBM writeback.
    o_ref[...] = (y - lse).astype(o_ref.dtype)


@functools.partial(jax.jit, static_argnames=("tm", "use_bf16"))
def pooling_layer_forward(x, params, *, tm=2048, use_bf16=True):
    """x: (N, IN) float32. Returns log_softmax(MLP(x), axis=-1) of shape (N, OUT)."""
    N, IN = x.shape
    w1, b1, gamma, beta, run_mean, run_var, w2, b2 = params
    H = w1.shape[0]
    OUT = w2.shape[0]
    eps = 1e-5

    # ---- fold eval-mode BatchNorm into Linear-1 (exact) ----
    inv_std = 1.0 / jnp.sqrt(run_var + eps)
    bn_scale = gamma * inv_std                                   # (H,)
    bn_shift = beta - run_mean * bn_scale                        # (H,)
    w1_fused = w1.T * bn_scale[None, :]                          # (IN, H)
    b1_fused = (b1 * bn_scale + bn_shift).reshape(1, H)          # (1, H), stays f32

    # ---- lane-dense output: pad OUT up to 128 lanes; sentinel bias stays f32 ----
    OUT_PAD = max(LANE, _round_up(OUT, LANE))
    w2_t = jnp.zeros((H, OUT_PAD), jnp.float32).at[:, :OUT].set(w2.T)
    b2_pad = jnp.full((1, OUT_PAD), -1e9, jnp.float32).at[:, :OUT].set(b2.reshape(1, OUT))

    # ---- matmul/store dtypes: bf16 MXU path + bf16 writeback, or all-f32 for checking ----
    mm_dtype = jnp.bfloat16 if use_bf16 else jnp.float32
    out_dtype = jnp.bfloat16 if use_bf16 else jnp.float32
    w1_fused = w1_fused.astype(mm_dtype)
    w2_t = w2_t.astype(mm_dtype)
    # x stays f32: the cast happens inside the kernel (no extra XLA pass over x).

    # ---- row tile: big tiles amortize per-step overhead; keep >=2 steps for v7x megacore ----
    tm_eff = min(tm, _round_up(N, 8))
    if N >= 16:
        tm_eff = min(tm_eff, _round_up(-(-N // 2), 8))
    tm_eff = max(tm_eff, 8)

    grid = (pl.cdiv(N, tm_eff),)        # partial last block allowed (rows are independent)

    out = pl.pallas_call(
        pooling_layer_kernel,
        out_shape=jax.ShapeDtypeStruct((N, OUT_PAD), out_dtype),
        grid_spec=pltpu.PrefetchScalarGridSpec(
            num_scalar_prefetch=0,
            grid=grid,
            in_specs=[
                pl.BlockSpec((tm_eff, IN), lambda i: (i, 0)),       # x row-tile (streamed, f32)
                pl.BlockSpec((IN, H), lambda i: (0, 0)),            # W1 (BN-folded), resident
                pl.BlockSpec((1, H), lambda i: (0, 0)),             # b1 (BN-folded), f32
                pl.BlockSpec((H, OUT_PAD), lambda i: (0, 0)),       # W2 (lane-padded), resident
                pl.BlockSpec((1, OUT_PAD), lambda i: (0, 0)),       # b2 (lane-padded), f32
            ],
            out_specs=pl.BlockSpec((tm_eff, OUT_PAD), lambda i: (i, 0)),
        ),
        compiler_params=pltpu.CompilerParams(
            dimension_semantics=("parallel",),
            vmem_limit_bytes=32 * 1024 * 1024,
        ),
    )(x, w1_fused, b1_fused, w2_t, b2_pad)

    return out[:, :OUT]


def reference_forward(x, params):
    w1, b1, gamma, beta, run_mean, run_var, w2, b2 = params
    eps = 1e-5
    h = x @ w1.T + b1
    h = (h - run_mean) / jnp.sqrt(run_var + eps) * gamma + beta
    h = jnp.maximum(h, 0.0)
    y = h @ w2.T + b2
    return jax.nn.log_softmax(y, axis=-1)


if __name__ == "__main__":
    # Small shapes consistent with the module: N nodes (not a multiple of 8, to exercise the
    # ragged/partial last block), in=32, hidden=32, out=8 classes.
    N, IN, H, OUT = 50, 32, 32, 8

    key = jax.random.PRNGKey(0)
    kx, kw1, kb1, kg, kb, km, kv, kw2, kb2 = jax.random.split(key, 9)

    x = jax.random.normal(kx, (N, IN), dtype=jnp.float32)

    # Deterministic synthetic parameters (shapes from MLP(in, hidden, out, 2, dropout), eval mode).
    params = (
        jax.random.normal(kw1, (H, IN), dtype=jnp.float32) * 0.1,      # lin0.weight
        jax.random.normal(kb1, (H,), dtype=jnp.float32) * 0.1,         # lin0.bias
        1.0 + 0.1 * jax.random.normal(kg, (H,), dtype=jnp.float32),    # bn.weight (gamma)
        0.1 * jax.random.normal(kb, (H,), dtype=jnp.float32),          # bn.bias (beta)
        0.1 * jax.random.normal(km, (H,), dtype=jnp.float32),          # bn.running_mean
        1.0 + 0.05 * jax.random.uniform(kv, (H,), dtype=jnp.float32),  # bn.running_var
        jax.random.normal(kw2, (OUT, H), dtype=jnp.float32) * 0.1,     # lin1.weight
        jax.random.normal(kb2, (OUT,), dtype=jnp.float32) * 0.1,       # lin1.bias
    )

    ref = reference_forward(x, params)

    # f32 matmul + f32 store path: tight tolerance (only BN-fold reassociation differences).
    out_f32 = jax.block_until_ready(pooling_layer_forward(x, params, use_bf16=False))
    assert out_f32.shape == (N, OUT)
    assert jnp.allclose(out_f32, ref, atol=1e-4, rtol=1e-4), "f32 path mismatch vs reference"

    # bf16 matmul + bf16 store path (default, MXU-native, halved writeback): relaxed tolerance.
    out_bf16 = jax.block_until_ready(pooling_layer_forward(x, params, use_bf16=True))
    assert out_bf16.shape == (N, OUT)
    assert jnp.allclose(out_bf16.astype(jnp.float32), ref, atol=5e-2, rtol=5e-2), \
        "bf16 path mismatch vs reference"

    print("KERNEL_OK")
</pallas_src>

<mosaic_0001>
module attributes {stable_mosaic.version = 11 : i64} {
  func.func @pooling_layer_kernel(%arg0: i32, %arg1: memref<32x32xf32, #tpu.memory_space<vmem>>, %arg2: memref<32x32xf32, #tpu.memory_space<vmem>>, %arg3: memref<1x32xf32, #tpu.memory_space<vmem>>, %arg4: memref<32x128xf32, #tpu.memory_space<vmem>>, %arg5: memref<1x128xf32, #tpu.memory_space<vmem>>, %arg6: memref<32x128xf32, #tpu.memory_space<vmem>>) attributes {dimension_semantics = [#tpu.dimension_semantics<parallel>], iteration_bounds = array<i64: 2>, scalar_prefetch = 0 : i64, scratch_operands = 0 : i64, tpu.core_type = #tpu.core_type<tc>, window_params = [{transform_indices = @transform_0, window_bounds = array<i64: 32, 32>}, {pipeline_mode = #tpu.pipeline_mode<synchronous>, transform_indices = @transform_1, window_bounds = array<i64: 32, 32>}, {pipeline_mode = #tpu.pipeline_mode<synchronous>, transform_indices = @transform_2, window_bounds = array<i64: 1, 32>}, {pipeline_mode = #tpu.pipeline_mode<synchronous>, transform_indices = @transform_3, window_bounds = array<i64: 32, 128>}, {pipeline_mode = #tpu.pipeline_mode<synchronous>, transform_indices = @transform_4, window_bounds = array<i64: 1, 128>}, {transform_indices = @transform_5, window_bounds = array<i64: 32, 128>}]} {
    %c0 = arith.constant 0 : index
    %c0_0 = arith.constant 0 : index
    %0 = vector.load %arg1[%c0, %c0_0] : memref<32x32xf32, #tpu.memory_space<vmem>>, vector<32x32xf32>
    %c0_1 = arith.constant 0 : index
    %c0_2 = arith.constant 0 : index
    %1 = vector.load %arg2[%c0_1, %c0_2] : memref<32x32xf32, #tpu.memory_space<vmem>>, vector<32x32xf32>
    %cst = arith.constant dense<0.000000e+00> : vector<32x32xf32>
    %2 = tpu.matmul %0, %1, %cst {dimension_numbers = #tpu.dot_dimension_numbers<[1], [0], [0], [1], [0, 0, 1, 1], [], []>} : vector<32x32xf32>, vector<32x32xf32>, vector<32x32xf32> -> vector<32x32xf32>
    %c0_3 = arith.constant 0 : index
    %c0_4 = arith.constant 0 : index
    %3 = vector.load %arg3[%c0_3, %c0_4] : memref<1x32xf32, #tpu.memory_space<vmem>>, vector<1x32xf32>
    %4 = vector.broadcast %3 : vector<1x32xf32> to vector<32x32xf32>
    %5 = arith.addf %2, %4 : vector<32x32xf32>
    %cst_5 = arith.constant 0.000000e+00 : f32
    %6 = vector.broadcast %cst_5 : f32 to vector<32x32xf32>
    %7 = arith.maximumf %5, %6 : vector<32x32xf32>
    %c0_6 = arith.constant 0 : index
    %c0_7 = arith.constant 0 : index
    %8 = vector.load %arg4[%c0_6, %c0_7] : memref<32x128xf32, #tpu.memory_space<vmem>>, vector<32x128xf32>
    %cst_8 = arith.constant dense<0.000000e+00> : vector<32x128xf32>
    %9 = tpu.matmul %7, %8, %cst_8 {dimension_numbers = #tpu.dot_dimension_numbers<[1], [0], [0], [1], [0, 0, 1, 1], [], []>} : vector<32x32xf32>, vector<32x128xf32>, vector<32x128xf32> -> vector<32x128xf32>
    %c0_9 = arith.constant 0 : index
    %c0_10 = arith.constant 0 : index
    %10 = vector.load %arg5[%c0_9, %c0_10] : memref<1x128xf32, #tpu.memory_space<vmem>>, vector<1x128xf32>
    %11 = vector.broadcast %10 : vector<1x128xf32> to vector<32x128xf32>
    %12 = arith.addf %9, %11 : vector<32x128xf32>
    %cst_11 = arith.constant dense<0xFF800000> : vector<32xf32>
    %13 = vector.multi_reduction <maximumf>, %12, %cst_11 [1] : vector<32x128xf32> to vector<32xf32>
    %14 = vector.shape_cast %13 : vector<32xf32> to vector<32x1xf32>
    %15 = vector.broadcast %14 : vector<32x1xf32> to vector<32x128xf32>
    %16 = arith.subf %12, %15 : vector<32x128xf32>
    %17 = math.exp %16 : vector<32x128xf32>
    %cst_12 = arith.constant dense<0.000000e+00> : vector<32xf32>
    %18 = vector.multi_reduction <add>, %17, %cst_12 [1] : vector<32x128xf32> to vector<32xf32>
    %19 = vector.shape_cast %18 : vector<32xf32> to vector<32x1xf32>
    %20 = math.log %19 : vector<32x1xf32>
    %21 = arith.addf %20, %14 : vector<32x1xf32>
    %22 = vector.broadcast %21 : vector<32x1xf32> to vector<32x128xf32>
    %23 = arith.subf %12, %22 : vector<32x128xf32>
    %c0_13 = arith.constant 0 : index
    %c0_14 = arith.constant 0 : index
    %24 = vector.load %arg6[%c0_13, %c0_14] : memref<32x128xf32, #tpu.memory_space<vmem>>, vector<32x128xf32>
    tpu.vector_store %arg6[%c0_13, %c0_14], %23 {strides = array<i32>} : memref<32x128xf32, #tpu.memory_space<vmem>>, vector<32x128xf32>,
    return
  }
  func.func @transform_0(%arg0: i32) -> (i32, i32) {
    %c0_i32 = arith.constant 0 : i32
    %c0_i32_0 = arith.constant 0 : i32
    return %arg0, %c0_i32 : i32, i32
  }
  func.func @transform_1(%arg0: i32) -> (i32, i32) {
    %c0_i32 = arith.constant 0 : i32
    %c0_i32_0 = arith.constant 0 : i32
    %c0_i32_1 = arith.constant 0 : i32
    return %c0_i32, %c0_i32_0 : i32, i32
  }
  func.func @transform_2(%arg0: i32) -> (i32, i32) {
    %c0_i32 = arith.constant 0 : i32
    %c0_i32_0 = arith.constant 0 : i32
    %c0_i32_1 = arith.constant 0 : i32
    return %c0_i32, %c0_i32_0 : i32, i32
  }
  func.func @transform_3(%arg0: i32) -> (i32, i32) {
    %c0_i32 = arith.constant 0 : i32
    %c0_i32_0 = arith.constant 0 : i32
    %c0_i32_1 = arith.constant 0 : i32
    return %c0_i32, %c0_i32_0 : i32, i32
  }
  func.func @transform_4(%arg0: i32) -> (i32, i32) {
    %c0_i32 = arith.constant 0 : i32
    %c0_i32_0 = arith.constant 0 : i32
    %c0_i32_1 = arith.constant 0 : i32
    return %c0_i32, %c0_i32_0 : i32, i32
  }
  func.func @transform_5(%arg0: i32) -> (i32, i32) {
    %c0_i32 = arith.constant 0 : i32
    %c0_i32_0 = arith.constant 0 : i32
    return %arg0, %c0_i32 : i32, i32
  }
}

</mosaic_0001>

<bundles_post_ra>
// kernel: pooling_layer_forward.1
= control target key start
LH: loop header
LB: loop body
LE: loop exit
PB: predicated region body
PF: predicated region fallthrough
CT: control target
= control target key end

     0   :  { %s1065_s18 = smov 0   ;;  %s1067_s19 = smov 0   ;;  %s1203_s0 = inlined_call_operand.vmem [shape: f32[50,32], index: 0, kind: input, shape index: {}]   ;;  %s1204_s1 = inlined_call_operand.vmem [shape: f32[32,32], index: 1, kind: input, shape index: {}]   ;;  %s1205_s2 = inlined_call_operand.vmem [shape: f32[1,32], index: 2, kind: input, shape index: {}]   ;;  %s1206_s3 = inlined_call_operand.vmem [shape: f32[32,128], index: 3, kind: input, shape index: {}]   ;;  %s1207_s4 = inlined_call_operand.vmem [shape: f32[1,128], index: 4, kind: input, shape index: {}]   ;;  %s1208_s5 = inlined_call_operand.vmem [shape: f32[50,128], index: 5, kind: output, shape index: {}]  }
   0x1   :  { %s1069_s20 = smov 0  }
   0x2 LB: > { %s1078_s21 = sadd.s32 4294967295, %s1001_s20   ;;  %s1080_s22 = sadd.s32 1, %s1001_s20   ;;  %s1001_s20 = sphi %s1069_s20, %s1215_s20   ;;  %s997_s19 = sphi %s1067_s19, %s1214_s19   ;;  %s993_s18 = sphi %s1065_s18, %s1213_s18  }
   0x3   : > { %s129_s23 = ssub.s32 %s1001_s20, %s1080_s22  ;;  %s132_s24 = sadd.s32 1, %s997_s19 }
   0x4   : > { %p130_p0 = scmp.eq.s32.totalorder %s129_s23, 0  ;;  %p142_p1 = scmp.ne.s32.totalorder %s997_s19, %s993_s18 }
   0x5   : > { %p143_p2 = scmp.eq.s32.totalorder %s1078_s21, 1  ;;  %p749_p3 = scmp.ge.s32.totalorder %s1001_s20, 1 }
   0x6   : > { %s1088_s25 = scalar_select %p130_p0, %s997_s19, %s132_s24  }
   0x7   : > { %p1090_p4 = por %p143_p2, %p142_p1  ;;  %p196_p5 = scmp.lt.s32.totalorder %s1001_s20, 3 }
   0x9   : > { %p197_p6 = pnand %p749_p3, %p196_p5 }
   0xa   : > { %v250_v0 = vld [vmem:[%s1204_s1] sm:$0xff] (!%p197_p6)  ;;  %v251_v1 = vld [vmem:[%s1204_s1 + $0x8] sm:$0xff] (!%p197_p6)  ;;  %v252_v2 = vld [vmem:[%s1204_s1 + $0x10] sm:$0xff] (!%p197_p6)  ;;  %s1104_s8 = sshll.u32 (!%p197_p6), %s1078_s21, 2  ;;  %vm261_vm0 = vcmask (!%p197_p6), 261120   ;;  %s224_s10 = sand.u32 (!%p197_p6), 1, %s993_s18  }
   0xb   : > { %200 = sbr.rel (%p197_p6) target bundleno = 832 (0x340), region = 40  ;;  %v827_v3 = vpack.c.bf16 (!%p197_p6), %v251_v1, %v250_v0  ;;  %v253_v4 = vld [vmem:[%s1204_s1 + $0x18] sm:$0xff] (!%p197_p6)  ;;  %p232_p7 = scmp.lt.s32.totalorder (!%p197_p6), %s1104_s8, 6  ;;  %v363_v5 = vld [vmem:[%s1206_s3] sm:$0xff] (!%p197_p6)  ;;  %v364_v6 = vld [vmem:[%s1206_s3 + $0x8] sm:$0xff] (!%p197_p6) }
   0xc   : > { %v831_v7 = vpack.c.bf16 (!%p197_p6), %v253_v4, %v252_v2  ;;  %v835_v8 = vpack.c.bf16 (!%p197_p6), %v364_v6, %v363_v5  ;;  %v365_v13 = vld [vmem:[%s1206_s3 + $0x10] sm:$0xff] (!%p197_p6)  ;;  %v366_v14 = vld [vmem:[%s1206_s3 + $0x18] sm:$0xff] (!%p197_p6)  ;;  %v753_v16 = vld [vmem:[%s1205_s2] ss:$0 sm:$0xff] (!%p197_p6)  ;;  %s750_s11 = sshll.u32 (!%p197_p6), %s224_s10, 5 }
   0xd   : > { %828 = vmatprep.subr.bf16.mxu0 (!%p197_p6), %v827_v3  ;;  %v839_v15 = vpack.c.bf16 (!%p197_p6), %v366_v14, %v365_v13  ;;  %v758_v29 = vld [vmem:[%s1207_s4] ss:$0 sm:$0xff] (!%p197_p6)  ;;  %s1141_s12 = scalar_lea.vmem (!%p197_p6), [#allocation2], %s750_s11  }
   0xe   : > { %830 = vmatpush3.bf16.msra.mxu0 (!%p197_p6), %v827_v3  ;;  %836 = vmatprep.subr.bf16.mxu1 (!%p197_p6), %v835_v8 }
   0xf   : > { %832 = vmatprep.subr.bf16.mxu0 (!%p197_p6), %v831_v7  ;;  %838 = vmatpush3.bf16.msra.mxu1 (!%p197_p6), %v835_v8 }
  0x10   : > { %840 = vmatprep.subr.bf16.mxu1 (!%p197_p6), %v839_v15 }
  0x12   : > { %s233_s15 = scalar_select %p232_p7, %s1104_s8, 6  ;;  %834 = vmatpush3.bf16.msra.mxu0 %v831_v7 }
  0x13   : > { %842 = vmatpush3.bf16.msra.mxu1 %v839_v15  ;;  %s527_s18 = ssub.s32 (%p1090_p4), 7, %s1104_s8  ;;  %s780_s13 = sshll.u32 (%p1090_p4), %s1078_s21, 5 }
  0x14   : > { %s752_s16 = sshll.u32 %s233_s15, 3  ;;  %p528_p8 = scmp.lt.s32.totalorder (%p1090_p4), %s527_s18, 4 }
  0x15   : > { %s235_s23 = scalar_lea.vmem %s1203_s0, %s752_s16  ;;  %s1154_s16 = scalar_lea.vmem (%p1090_p4), %s1208_s5, %s780_s13  }
  0x16   : > { %v246_v9 = vld [vmem:[%s235_s23] sm:$0xff]  ;;  %v247_v10 = vld [vmem:[%s235_s23 + $0x8] sm:$0xff]  ;;  %v248_v11 = vld [vmem:[%s235_s23 + $0x10] sm:$0xff] }
  0x17   : > { %807 = vmatprep.mubr.msk.f32.mxu0 %vm261_vm0, %v246_v9  ;;  %v249_v12 = vld [vmem:[%s235_s23 + $0x18] sm:$0xff] }
  0x18   : > { %808 = vmatmul.mubr.msk.f32.vlgmr.msra.gmra.mrb[0].mxu0 %vm261_vm0, %v247_v10 }
  0x19   : > { %810 = vmatprep.mubr.msk.f32.mxu0 %vm261_vm0, %v248_v11 }
  0x1c   : > { %811 = vmatmul.mubr.msk.f32.gmra.mrb[2].mxu0 %vm261_vm0, %v249_v12 }
  0xeb   : > { %v809_v17 = vpop.f32.mrb[0].mxu0 }
  0xec   : > { %v346_v18 = vadd.f32 %v809_v17, %v753_v16  ;;  %v340_v19 = vpop.f32.mrb[1].mxu0 }
  0xed   : > { %v341_v20 = vadd.f32 %v753_v16, %v340_v19 }
  0xee   : > { %v360_v23 = vmax.f32 %v346_v18, 0.0 }
  0xef   : > { %v359_v21 = vmax.f32 %v341_v20, 0.0  ;;  %v812_v22 = vpop.f32.mrb[2].mxu0 }
  0xf0   : > { %v356_v24 = vadd.f32 %v812_v22, %v753_v16  ;;  %v350_v25 = vpop.f32.mrb[3].mxu0 }
  0xf1   : > { %v351_v26 = vadd.f32 %v753_v16, %v350_v25  ;;  %821 = vmatprep.mubr.msk.f32.mxu1 %vm261_vm0, %v359_v21 }
  0xf2   : > { %822 = vmatmul.mubr.msk.f32.vlgmr.msra.gmra.mrb[0].mxu1 %vm261_vm0, %v360_v23  ;;  %v362_v28 = vmax.f32 %v356_v24, 0.0 }
  0xf3   : > { %v361_v27 = vmax.f32 %v351_v26, 0.0 }
  0xf5   : > { %824 = vmatprep.mubr.msk.f32.mxu1 %vm261_vm0, %v361_v27 }
  0xf6   : > { %825 = vmatmul.mubr.msk.f32.gmra.mrb[2].mxu1 %vm261_vm0, %v362_v28 }
 0x1c5   : > { %v823_v30 = vpop.f32.mrb[0].mxu1 }
 0x1c6   : > { %v452_v31 = vpop.f32.mrb[1].mxu1  ;;  %v458_v35 = vadd.f32 %v823_v30, %v758_v29 }
 0x1c7   : > { %v453_v32 = vadd.f32 %v758_v29, %v452_v31 }
 0x1c9   : > { %v826_v33 = vpop.f32.mrb[2].mxu1  ;;  %471 = vmax.xlane.f32.xlu0 %v453_v32 }
 0x1ca   : > { %v462_v34 = vpop.f32.mrb[3].mxu1  ;;  %v468_v37 = vadd.f32 %v826_v33, %v758_v29 }
 0x1cb   : > { %v463_v36 = vadd.f32 %v758_v29, %v462_v34 }
 0x1cd   : > { %475 = vmax.xlane.f32.xlu1 %v463_v36  ;;  %473 = vmax.xlane.f32.xlu0 %v458_v35 }
 0x1d1   : > { %477 = vmax.xlane.f32.xlu1 %v468_v37 }
 0x256   : > { %v472_v38 = vpop.xlane.xlu0 %471 }
 0x257   : > { %v479_v39 = vsub.f32 %v453_v32, %v472_v38 }
 0x259   : > { %v483_v40 = vmul.f32 1.442695, %v479_v39 }
 0x25a   : > { %v476_v41 = vpop.xlane.xlu1 %475  ;;  %v474_v42 = vpop.xlane.xlu0 %473 }
 0x25b   : > { %931 = vpow2.f32 %v483_v40  ;;  %v481_v43 = vsub.f32 %v463_v36, %v476_v41  ;;  %v480_v44 = vsub.f32 %v458_v35, %v474_v42 }
 0x25d   : > { %v487_v45 = vmul.f32 1.442695, %v481_v43  ;;  %v485_v46 = vmul.f32 1.442695, %v480_v44 }
 0x25e   : > { %v478_v47 = vpop.xlane.xlu1 %477 }
 0x25f   : > { %933 = vpow2.f32 %v487_v45  ;;  %v482_v48 = vsub.f32 %v468_v37, %v478_v47 }
 0x260   : > { %935 = vpow2.f32 %v485_v46 }
 0x261   : > { %v489_v49 = vmul.f32 1.442695, %v482_v48 }
 0x263   : > { %937 = vpow2.f32 %v489_v49 }
 0x265   : > { %v932_v50 = vpop.eup %931 }
 0x266   : > { %491 = vadd.xlane.f32.xlu0 %v932_v50 }
 0x269   : > { %v934_v51 = vpop.eup %933 }
 0x26a   : > { %v936_v52 = vpop.eup %935  ;;  %495 = vadd.xlane.f32.xlu0 %v934_v51 }
 0x26b   : > { %493 = vadd.xlane.f32.xlu1 %v936_v52 }
 0x26d   : > { %v938_v53 = vpop.eup %937 }
 0x26f   : > { %497 = vadd.xlane.f32.xlu1 %v938_v53 }
 0x2f3   : > { %v492_v54 = vpop.xlane.xlu0 %491 }
 0x2f4   : > { %939 = vlog2.f32 %v492_v54 }
 0x2f7   : > { %v496_v55 = vpop.xlane.xlu0 %495 }
 0x2f8   : > { %v494_v56 = vpop.xlane.xlu1 %493  ;;  %941 = vlog2.f32 %v496_v55 }
 0x2f9   : > { %943 = vlog2.f32 %v494_v56 }
 0x2fc   : > { %v498_v57 = vpop.xlane.xlu1 %497 }
 0x2fd   : > { %945 = vlog2.f32 %v498_v57 }
 0x2fe   : > { %v940_v58 = vpop.eup %939 }
 0x2ff   : > { %v500_v59 = vmul.f32 0.6931472, %v940_v58 }
 0x301   : > { %v507_v60 = vadd.f32 %v500_v59, %v472_v38 }
 0x302   : > { %v942_v61 = vpop.eup %941 }
 0x303   : > { %v944_v62 = vpop.eup %943  ;;  %v511_v63 = vsub.f32 %v453_v32, %v507_v60  ;;  %v504_v0 = vmul.f32 0.6931472, %v942_v61 }
 0x304   : > { %v502_v1 = vmul.f32 0.6931472, %v944_v62 }
 0x305   : > { %515 = vst [vmem:[%s1141_s12] sm:$0xff] %v511_v63  ;;  %v509_v2 = vadd.f32 %v504_v0, %v476_v41 }
 0x306   : > { %v508_v3 = vadd.f32 %v502_v1, %v474_v42 }
 0x307   : > { %v946_v4 = vpop.eup %945  ;;  %v513_v5 = vsub.f32 %v463_v36, %v509_v2 }
 0x308   : > { %v512_v6 = vsub.f32 %v458_v35, %v508_v3  ;;  %v506_v7 = vmul.f32 0.6931472, %v946_v4  ;;  %525 = sbr.rel (!%p1090_p4) target bundleno = 832 (0x340), region = 44 }
 0x309   : > { %517 = vst [vmem:[%s1141_s12 + $0x10] sm:$0xff] %v513_v5 }
 0x30a   : > { %516 = vst [vmem:[%s1141_s12 + $0x8] sm:$0xff] %v512_v6  ;;  %v510_v8 = vadd.f32 %v506_v7, %v478_v47 }
 0x30c   : > { %v514_v9 = vsub.f32 %v468_v37, %v510_v8 }
 0x30e   : > { %518 = vst [vmem:[%s1141_s12 + $0x18] sm:$0xff] %v514_v9 }
 0x30f   : > { %s1217_s18 = smov (!%p528_p8, %s527_s18), 4 }
 0x310   : > { %s765_s17 = sshll.u32 %s1217_s18, 7 }
 0x311   : > { %p768_p9 = scmp.eq.s32.totalorder %s765_s17, 0 }
 0x312   : > { %s1160_s20 = sshrl.u32 (!%p768_p9), %s1217_s18, 2 }
 0x313   : > { %536 = sbr.rel (%p768_p9) target bundleno = 832 (0x340), region = 48  ;;  %p769_p10 = scmp.le.s32.totalorder (!%p768_p9), %s1160_s20, 0 }
 0x31a   : > { %702 = sbr.rel (%p769_p10) target bundleno = 811 (0x32b), region = 124  ;;  %s1210_s21 = smov (!%p769_p10), %s1154_s16 }
 0x31b   : > { %s1211_s26 = smov (!%p769_p10), %s1141_s12  ;;  %s1169_s8 = smov (!%p769_p10), 0  }
 0x31c   : > { %s1015_s23 = smov (!%p769_p10), 0  }
 0x321 LB: >> { %v604_v10 = vld [vmem:[%s1009_s26] sm:$0xff]  ;;  %v606_v11 = vld [vmem:[%s1009_s26 + $0x8] sm:$0xff]  ;;  %v608_v12 = vld [vmem:[%s1009_s26 + $0x10] sm:$0xff]  ;;  %s612_s24 = sadd.s32 1, %s1013_s8  ;;  %s598_s23 = sadd.s32 1, %s1017_s23   ;;  %s1017_s23 = sphi %s1015_s23, %s598_s23   ;;  %s1013_s8 = sphi %s1169_s8, %s1212_s8   ;;  %s1009_s26 = sphi %s1211_s26, %s617_s26   ;;  %s1005_s21 = sphi %s1210_s21, %s618_s21  }
 0x322   : >> { %605 = vst [vmem:[%s1005_s21] sm:$0xff] %v604_v10  ;;  %607 = vst [vmem:[%s1005_s21 + $0x8] sm:$0xff] %v606_v11  ;;  %v610_v13 = vld [vmem:[%s1009_s26 + $0x18] sm:$0xff]  ;;  %p613_p11 = scmp.ge.s32.totalorder %s612_s24, %s1160_s20  ;;  %p597_p12 = scmp.ge.s32.totalorder %s598_s23, %s1160_s20 }
 0x323   : >> { %609 = vst [vmem:[%s1005_s21 + $0x10] sm:$0xff] %v608_v12  ;;  %611 = vst [vmem:[%s1005_s21 + $0x18] sm:$0xff] %v610_v13 }
 0x324   : >> { %s1219_s24 = smov (%p613_p11, %s612_s24), 0  ;;  %600 = sbr.rel (!%p597_p12) target bundleno = 801 (0x321), region = 130 }
 0x325   : >> { %s770_s27 = sshll.u32 %s1219_s24, 5  ;;  %s1212_s8 = smov %s1219_s24 }
 0x326   : >> { %s617_s26 = scalar_lea.vmem %s1141_s12, %s770_s27 [#allocation2]   ;;  %s618_s21 = scalar_lea.vmem %s1154_s16, %s770_s27  }
 0x32b PF: > { %s1185_s28 = sand.u32 3, %s1217_s18   ;;  %s781_s29 = sshll.u32 %s1160_s20, 5 }
 0x32c   : > { %s623_s30 = scalar_lea.vmem %s1141_s12, %s781_s29 [#allocation2]   ;;  %s625_s6 = scalar_lea.vmem %s1154_s16, %s781_s29  }
 0x32d   : > { %p775_p13 = scmp.le.s32.totalorder %s1185_s28, 0 }
 0x32e   : > { %s1019_s7 = smov (!%p775_p13), %s625_s6   ;;  %s1023_s9 = smov (!%p775_p13), %s623_s30  }
 0x32f   : > { %716 = sbr.rel (%p775_p13) target bundleno = 832 (0x340), region = 135  ;;  %s1027_s10 = smov (!%p775_p13), 0  }
 0x330   : > { %s1031_s11 = smov (!%p775_p13), 0  }
 0x336 LB: >> { %v635_v14 = vld [vmem:[%s1025_s9] sm:$0xff]  ;;  %s637_s18 = sadd.s32 1, %s1029_s10  ;;  %s629_s11 = sadd.s32 1, %s1033_s11   ;;  %s1033_s11 = sphi %s1031_s11, %s629_s11   ;;  %s1029_s10 = sphi %s1027_s10, %s1028_s10   ;;  %s1025_s9 = sphi %s1023_s9, %s642_s9   ;;  %s1021_s7 = sphi %s1019_s7, %s643_s7  }
 0x337   : >> { %636 = vst [vmem:[%s1021_s7] sm:$0xff] %v635_v14  ;;  %p638_p0 = scmp.ge.s32.totalorder %s637_s18, %s1185_s28  ;;  %p628_p1 = scmp.ge.s32.totalorder %s629_s11, %s1185_s28 }
 0x339   : >> { %s1221_s18 = smov (%p638_p0, %s637_s18), 0  ;;  %631 = sbr.rel (!%p628_p1) target bundleno = 822 (0x336), region = 141 }
 0x33a   : >> { %s776_s12 = sshll.u32 %s1221_s18, 3  ;;  %s1028_s10 = smov %s1221_s18  }
 0x33b   : >> { %s642_s9 = scalar_lea.vmem %s623_s30, %s776_s12 [#allocation2]   ;;  %s643_s7 = scalar_lea.vmem %s625_s6, %s776_s12  }
 0x340 PF: > { %p12_p2 = scmp.ge.s32.totalorder %s1080_s22, 4   ;;  %s1213_s18 = smov %s997_s19 }
 0x341   : > { %s1214_s19 = smov %s1088_s25  ;;  %s1215_s20 = smov %s1080_s22 }
 0x342   :  { %14 = sbr.rel (!%p12_p2) target bundleno = 2 (0x2), region = 152 }

</bundles_post_ra>
